<compile_context>
chip_gen: v7x
topology: tpu7x:2x2x1
jax: 0.10.0
libtpu: 0.0.40
codegen_flags: <defaults>
</compile_context>

<pallas_src>
import jax
import jax.numpy as jnp
from jax.experimental import pallas as pl
from jax.experimental.pallas import tpu as pltpu


def _simclr_fused_kernel(x_ref, wbb_ref, w1_ref, w2_ref, o_ref):
    # x_ref:   [TN, C*HW] f32
    # wbb_ref: [C*HW, F]  bf16  (1/HW folded in, rows repeated per spatial pos)
    # w1_ref:  [F, F]     bf16
    # w2_ref:  [F, Ppad]  bf16  (columns >= P are zero)
    # o_ref:   [TN, Ppad] f32
    xb = x_ref[...].astype(jnp.bfloat16)          # per-tile cast, hidden under DMA
    feat = jnp.dot(xb, wbb_ref[...], preferred_element_type=jnp.float32)
    z1 = jnp.maximum(
        jnp.dot(feat.astype(jnp.bfloat16), w1_ref[...],
                preferred_element_type=jnp.float32), 0.0)
    z2 = jnp.dot(z1.astype(jnp.bfloat16), w2_ref[...],
                 preferred_element_type=jnp.float32)
    # F.normalize(dim=1): z / max(||z||, 1e-12) == z * rsqrt(max(||z||^2, 1e-24))
    # (padded columns of w2 are zero and do not contribute to the norm).
    inv = jax.lax.rsqrt(jnp.maximum(jnp.sum(z2 * z2, axis=-1, keepdims=True),
                                    1e-24))
    o_ref[...] = (z2 * inv).astype(o_ref.dtype)


def _simclr_pooled_kernel(x_ref, wbb_ref, w1_ref, w2_ref, o_ref):
    # Fallback when C*HW is too large to materialize the expanded backbone
    # weight in VMEM.  x_ref: [TN, C, HW] f32; wbb_ref: [C, F] bf16 (1/HW folded).
    pooled = jnp.sum(x_ref[...], axis=-1)                        # f32 spatial sum
    feat = jnp.dot(pooled.astype(jnp.bfloat16), wbb_ref[...],
                   preferred_element_type=jnp.float32)
    z1 = jnp.maximum(
        jnp.dot(feat.astype(jnp.bfloat16), w1_ref[...],
                preferred_element_type=jnp.float32), 0.0)
    z2 = jnp.dot(z1.astype(jnp.bfloat16), w2_ref[...],
                 preferred_element_type=jnp.float32)
    inv = jax.lax.rsqrt(jnp.maximum(jnp.sum(z2 * z2, axis=-1, keepdims=True),
                                    1e-24))
    o_ref[...] = (z2 * inv).astype(o_ref.dtype)


def _round_up(x, m):
    return ((x + m - 1) // m) * m


def _vmem_capacity_bytes():
    try:
        return int(pltpu.get_tpu_info().vmem_capacity_bytes)
    except Exception:
        return 64 * 1024 * 1024        # conservative (v7x per-TC VMEM)


def simclr_forward(x, w_backbone, w1, w2, *, tn=None, fuse_pool=None):
    """x: [b, c, h, w] float32. Returns [b, 2, projection_dim] float32."""
    b, c, h, w = x.shape
    hw = h * w
    k = c * hw
    f = w1.shape[0]
    p = w2.shape[1]
    p_pad = _round_up(p, 128)          # lane-dense output (no masked vst)
    x_bytes = x.dtype.itemsize

    # ---- Per-chip VMEM budget -> batch tile size --------------------------
    vmem_cap = _vmem_capacity_bytes()
    vmem_limit = min(int(vmem_cap * 0.85), 112 * 1024 * 1024)
    budget = int(vmem_limit * 0.85)    # headroom for compiler-internal scratch

    if fuse_pool is None:
        # Only fuse the pool into a deep-K matmul if the expanded [C*HW, F]
        # weight stays a small fraction of the budget (conservatively 2x buf).
        fuse_pool = 2 * (k * f * 2) <= budget // 4

    head_bytes = (f * f + f * p_pad) * 2
    wbb_bytes = (k * f * 2) if fuse_pool else (c * f * 2)
    weight_bytes = wbb_bytes + head_bytes

    if tn is None:
        per_row = 2 * k * x_bytes + 2 * p_pad * 4   # dbl-buffered x + out rows
        avail = budget - 2 * weight_bytes           # conservative: 2x weights
        tn = max(8, min(avail // per_row, 512, _round_up(b, 8)))
        tn = (tn // 128) * 128 if tn >= 128 else (tn // 8) * 8
        tn = max(tn, 8)
        # Ensure >=2 batch tiles when possible so "parallel" feeds both v7x TCs.
        while pl.cdiv(b, tn) < 2 and tn > 8:
            tn = max(8, ((tn // 2) // 8) * 8)

    grid = (pl.cdiv(b, tn),)           # ragged last tile over-reads; no jnp.pad

    # ---- Operand prep (weights only; x streams in untouched) --------------
    wbb = w_backbone * (1.0 / hw)                    # fold 1/HW into the weight
    if fuse_pool:
        x_in = x.reshape(b, k)                       # free row-major view
        wbb = jnp.repeat(wbb, hw, axis=0)            # [C*HW, F]
        x_spec = pl.BlockSpec((tn, k), lambda i: (i, 0))
        kernel = _simclr_fused_kernel
    else:
        x_in = x.reshape(b, c, hw)
        x_spec = pl.BlockSpec((tn, c, hw), lambda i: (i, 0, 0))
        kernel = _simclr_pooled_kernel
    wbb = wbb.astype(jnp.bfloat16)
    w1b = w1.astype(jnp.bfloat16)
    w2b = jnp.pad(w2, ((0, 0), (0, p_pad - p))).astype(jnp.bfloat16)

    cost = pl.CostEstimate(
        flops=2 * b * (k * f + f * f + f * p_pad),
        transcendentals=b,
        bytes_accessed=b * k * x_bytes + weight_bytes + b * p_pad * 4)
    cparams = pltpu.CompilerParams(
        dimension_semantics=("parallel",),           # megacore sharding on v7x
        vmem_limit_bytes=vmem_limit)

    def _wspec(arr, mode):
        if mode is None:
            return pl.BlockSpec(arr.shape, lambda i: (0,) * arr.ndim)
        return pl.BlockSpec(arr.shape, lambda i: (0,) * arr.ndim,
                            pipeline_mode=mode)

    def _run(weight_mode):
        return pl.pallas_call(
            kernel,
            out_shape=jax.ShapeDtypeStruct((b, p_pad), jnp.float32),
            grid=grid,
            in_specs=[x_spec,
                      _wspec(wbb, weight_mode),
                      _wspec(w1b, weight_mode),
                      _wspec(w2b, weight_mode)],
            out_specs=pl.BlockSpec((tn, p_pad), lambda i: (i, 0)),
            compiler_params=cparams,
            cost_estimate=cost,
        )(x_in, wbb, w1b, w2b)

    try:
        # Resident weights (constant index_map): single-buffer to reclaim VMEM
        # (matters most on v7x's 64 MiB) for a larger streamed x tile.
        out = _run(pl.Buffered(1))
    except Exception:
        # Fallback if this JAX build rejects buffer_count=1: default buffering.
        out = _run(None)

    z = out[:, :p]                                   # [b, P]
    # The module's two views are byte-identical -> broadcast into the view axis
    # (matches cat(unsqueeze, unsqueeze).view + head + normalize + view(b,2,-1)).
    return jnp.broadcast_to(z[:, None, :], (b, 2, p))


def _reference(x, w_backbone, w1, w2, *, fused):
    """Pure-JAX reference mirroring the kernel's bf16/f32 mixed precision."""
    b, c, h, w = x.shape
    hw = h * w
    p = w2.shape[1]
    w1b = w1.astype(jnp.bfloat16)
    w2b = w2.astype(jnp.bfloat16)
    if fused:
        wbb = jnp.repeat(w_backbone * (1.0 / hw), hw, axis=0).astype(jnp.bfloat16)
        feat = jnp.dot(x.reshape(b, c * hw).astype(jnp.bfloat16), wbb,
                       preferred_element_type=jnp.float32)
    else:
        wbb = (w_backbone * (1.0 / hw)).astype(jnp.bfloat16)
        pooled = jnp.sum(x.reshape(b, c, hw), axis=-1)
        feat = jnp.dot(pooled.astype(jnp.bfloat16), wbb,
                       preferred_element_type=jnp.float32)
    z1 = jnp.maximum(jnp.dot(feat.astype(jnp.bfloat16), w1b,
                             preferred_element_type=jnp.float32), 0.0)
    z2 = jnp.dot(z1.astype(jnp.bfloat16), w2b, preferred_element_type=jnp.float32)
    inv = jax.lax.rsqrt(jnp.maximum(jnp.sum(z2 * z2, axis=-1, keepdims=True),
                                    1e-24))
    zn = z2 * inv
    return jnp.broadcast_to(zn[:, None, :], (b, 2, p))


if __name__ == "__main__":
    # Small shapes consistent with the module's forward.
    b, c, h, w = 2, 4, 16, 16
    n_features, projection_dim = 32, 16

    key = jax.random.PRNGKey(0)
    kx, kbb, k1, k2 = jax.random.split(key, 4)

    x = jax.random.normal(kx, (b, c, h, w), dtype=jnp.float32)
    w_backbone = jax.random.normal(kbb, (c, n_features), jnp.float32) * 0.1
    w1 = jax.random.normal(k1, (n_features, n_features), jnp.float32) * 0.1
    w2 = jax.random.normal(k2, (n_features, projection_dim), jnp.float32) * 0.1

    # Default path (fused pool-into-matmul for these small shapes).
    out = jax.block_until_ready(simclr_forward(x, w_backbone, w1, w2))
    ref = _reference(x, w_backbone, w1, w2, fused=True)
    assert out.shape == (b, 2, projection_dim), out.shape
    assert jnp.allclose(out, ref, atol=2e-2, rtol=2e-2), "fused mismatch vs ref"

    # Also exercise the pooled fallback path (used for large C*HW).
    out_p = jax.block_until_ready(
        simclr_forward(x, w_backbone, w1, w2, fuse_pool=False))
    ref_p = _reference(x, w_backbone, w1, w2, fused=False)
    assert jnp.allclose(out_p, ref_p, atol=2e-2, rtol=2e-2), "pooled mismatch"

    print("KERNEL_OK")
</pallas_src>

<mosaic_0001>
module attributes {stable_mosaic.version = 11 : i64} {
  func.func @_simclr_fused_kernel(%arg0: i32, %arg1: memref<8x1024xf32, #tpu.memory_space<vmem>>, %arg2: memref<1024x32xbf16, #tpu.memory_space<vmem>>, %arg3: memref<32x32xbf16, #tpu.memory_space<vmem>>, %arg4: memref<32x128xbf16, #tpu.memory_space<vmem>>, %arg5: memref<8x128xf32, #tpu.memory_space<vmem>>) attributes {dimension_semantics = [#tpu.dimension_semantics<parallel>], iteration_bounds = array<i64: 1>, scalar_prefetch = 0 : i64, scratch_operands = 0 : i64, tpu.core_type = #tpu.core_type<tc>, window_params = [{transform_indices = @transform_0, window_bounds = array<i64: 8, 1024>}, {pipeline_mode = #tpu.pipeline_mode<synchronous>, transform_indices = @transform_1, window_bounds = array<i64: 1024, 32>}, {pipeline_mode = #tpu.pipeline_mode<synchronous>, transform_indices = @transform_2, window_bounds = array<i64: 32, 32>}, {pipeline_mode = #tpu.pipeline_mode<synchronous>, transform_indices = @transform_3, window_bounds = array<i64: 32, 128>}, {transform_indices = @transform_4, window_bounds = array<i64: 8, 128>}]} {
    %c0 = arith.constant 0 : index
    %c0_0 = arith.constant 0 : index
    %0 = vector.load %arg1[%c0, %c0_0] : memref<8x1024xf32, #tpu.memory_space<vmem>>, vector<8x1024xf32>
    %1 = arith.truncf %0 : vector<8x1024xf32> to vector<8x1024xbf16>
    %c0_1 = arith.constant 0 : index
    %c0_2 = arith.constant 0 : index
    %2 = vector.load %arg2[%c0_1, %c0_2] : memref<1024x32xbf16, #tpu.memory_space<vmem>>, vector<1024x32xbf16>
    %cst = arith.constant dense<0.000000e+00> : vector<8x32xf32>
    %3 = tpu.matmul %1, %2, %cst {dimension_numbers = #tpu.dot_dimension_numbers<[1], [0], [0], [1], [0, 0, 1, 1], [], []>} : vector<8x1024xbf16>, vector<1024x32xbf16>, vector<8x32xf32> -> vector<8x32xf32>
    %4 = arith.truncf %3 : vector<8x32xf32> to vector<8x32xbf16>
    %c0_3 = arith.constant 0 : index
    %c0_4 = arith.constant 0 : index
    %5 = vector.load %arg3[%c0_3, %c0_4] : memref<32x32xbf16, #tpu.memory_space<vmem>>, vector<32x32xbf16>
    %cst_5 = arith.constant dense<0.000000e+00> : vector<8x32xf32>
    %6 = tpu.matmul %4, %5, %cst_5 {dimension_numbers = #tpu.dot_dimension_numbers<[1], [0], [0], [1], [0, 0, 1, 1], [], []>} : vector<8x32xbf16>, vector<32x32xbf16>, vector<8x32xf32> -> vector<8x32xf32>
    %cst_6 = arith.constant 0.000000e+00 : f32
    %7 = vector.broadcast %cst_6 : f32 to vector<8x32xf32>
    %8 = arith.maximumf %6, %7 : vector<8x32xf32>
    %9 = arith.truncf %8 : vector<8x32xf32> to vector<8x32xbf16>
    %c0_7 = arith.constant 0 : index
    %c0_8 = arith.constant 0 : index
    %10 = vector.load %arg4[%c0_7, %c0_8] : memref<32x128xbf16, #tpu.memory_space<vmem>>, vector<32x128xbf16>
    %cst_9 = arith.constant dense<0.000000e+00> : vector<8x128xf32>
    %11 = tpu.matmul %9, %10, %cst_9 {dimension_numbers = #tpu.dot_dimension_numbers<[1], [0], [0], [1], [0, 0, 1, 1], [], []>} : vector<8x32xbf16>, vector<32x128xbf16>, vector<8x128xf32> -> vector<8x128xf32>
    %12 = arith.mulf %11, %11 : vector<8x128xf32>
    %cst_10 = arith.constant dense<0.000000e+00> : vector<8xf32>
    %13 = vector.multi_reduction <add>, %12, %cst_10 [1] : vector<8x128xf32> to vector<8xf32>
    %14 = vector.shape_cast %13 : vector<8xf32> to vector<8x1xf32>
    %cst_11 = arith.constant 1.000000e-24 : f32
    %15 = vector.broadcast %cst_11 : f32 to vector<8x1xf32>
    %16 = arith.maximumf %14, %15 : vector<8x1xf32>
    %17 = math.rsqrt %16 : vector<8x1xf32>
    %18 = vector.broadcast %17 : vector<8x1xf32> to vector<8x128xf32>
    %19 = arith.mulf %11, %18 : vector<8x128xf32>
    %c0_12 = arith.constant 0 : index
    %c0_13 = arith.constant 0 : index
    %20 = vector.load %arg5[%c0_12, %c0_13] : memref<8x128xf32, #tpu.memory_space<vmem>>, vector<8x128xf32>
    tpu.vector_store %arg5[%c0_12, %c0_13], %19 {strides = array<i32>} : memref<8x128xf32, #tpu.memory_space<vmem>>, vector<8x128xf32>,
    return
  }
  func.func @transform_0(%arg0: i32) -> (i32, i32) {
    %c0_i32 = arith.constant 0 : i32
    %c0_i32_0 = arith.constant 0 : i32
    return %arg0, %c0_i32 : i32, i32
  }
  func.func @transform_1(%arg0: i32) -> (i32, i32) {
    %c0_i32 = arith.constant 0 : i32
    %c0_i32_0 = arith.constant 0 : i32
    %c0_i32_1 = arith.constant 0 : i32
    return %c0_i32, %c0_i32_0 : i32, i32
  }
  func.func @transform_2(%arg0: i32) -> (i32, i32) {
    %c0_i32 = arith.constant 0 : i32
    %c0_i32_0 = arith.constant 0 : i32
    %c0_i32_1 = arith.constant 0 : i32
    return %c0_i32, %c0_i32_0 : i32, i32
  }
  func.func @transform_3(%arg0: i32) -> (i32, i32) {
    %c0_i32 = arith.constant 0 : i32
    %c0_i32_0 = arith.constant 0 : i32
    %c0_i32_1 = arith.constant 0 : i32
    return %c0_i32, %c0_i32_0 : i32, i32
  }
  func.func @transform_4(%arg0: i32) -> (i32, i32) {
    %c0_i32 = arith.constant 0 : i32
    %c0_i32_0 = arith.constant 0 : i32
    return %arg0, %c0_i32 : i32, i32
  }
}

module attributes {stable_mosaic.version = 11 : i64} {
  func.func @_simclr_fused_kernel(%arg0: i32, %arg1: memref<8x1024xf32, #tpu.memory_space<vmem>>, %arg2: memref<1024x32xbf16, #tpu.memory_space<vmem>>, %arg3: memref<32x32xbf16, #tpu.memory_space<vmem>>, %arg4: memref<32x128xbf16, #tpu.memory_space<vmem>>, %arg5: memref<8x128xf32, #tpu.memory_space<vmem>>) attributes {dimension_semantics = [#tpu.dimension_semantics<parallel>], iteration_bounds = array<i64: 1>, scalar_prefetch = 0 : i64, scratch_operands = 0 : i64, tpu.core_type = #tpu.core_type<tc>, window_params = [{transform_indices = @transform_0, window_bounds = array<i64: 8, 1024>}, {pipeline_mode = #tpu.pipeline_mode<synchronous>, transform_indices = @transform_1, window_bounds = array<i64: 1024, 32>}, {pipeline_mode = #tpu.pipeline_mode<synchronous>, transform_indices = @transform_2, window_bounds = array<i64: 32, 32>}, {pipeline_mode = #tpu.pipeline_mode<synchronous>, transform_indices = @transform_3, window_bounds = array<i64: 32, 128>}, {transform_indices = @transform_4, window_bounds = array<i64: 8, 128>}]} {
    %c0 = arith.constant 0 : index
    %c0_0 = arith.constant 0 : index
    %0 = vector.load %arg1[%c0, %c0_0] : memref<8x1024xf32, #tpu.memory_space<vmem>>, vector<8x1024xf32>
    %1 = arith.truncf %0 : vector<8x1024xf32> to vector<8x1024xbf16>
    %c0_1 = arith.constant 0 : index
    %c0_2 = arith.constant 0 : index
    %2 = vector.load %arg2[%c0_1, %c0_2] : memref<1024x32xbf16, #tpu.memory_space<vmem>>, vector<1024x32xbf16>
    %cst = arith.constant dense<0.000000e+00> : vector<8x32xf32>
    %3 = tpu.matmul %1, %2, %cst {dimension_numbers = #tpu.dot_dimension_numbers<[1], [0], [0], [1], [0, 0, 1, 1], [], []>} : vector<8x1024xbf16>, vector<1024x32xbf16>, vector<8x32xf32> -> vector<8x32xf32>
    %4 = arith.truncf %3 : vector<8x32xf32> to vector<8x32xbf16>
    %c0_3 = arith.constant 0 : index
    %c0_4 = arith.constant 0 : index
    %5 = vector.load %arg3[%c0_3, %c0_4] : memref<32x32xbf16, #tpu.memory_space<vmem>>, vector<32x32xbf16>
    %cst_5 = arith.constant dense<0.000000e+00> : vector<8x32xf32>
    %6 = tpu.matmul %4, %5, %cst_5 {dimension_numbers = #tpu.dot_dimension_numbers<[1], [0], [0], [1], [0, 0, 1, 1], [], []>} : vector<8x32xbf16>, vector<32x32xbf16>, vector<8x32xf32> -> vector<8x32xf32>
    %cst_6 = arith.constant 0.000000e+00 : f32
    %7 = vector.broadcast %cst_6 : f32 to vector<8x32xf32>
    %8 = arith.maximumf %6, %7 : vector<8x32xf32>
    %9 = arith.truncf %8 : vector<8x32xf32> to vector<8x32xbf16>
    %c0_7 = arith.constant 0 : index
    %c0_8 = arith.constant 0 : index
    %10 = vector.load %arg4[%c0_7, %c0_8] : memref<32x128xbf16, #tpu.memory_space<vmem>>, vector<32x128xbf16>
    %cst_9 = arith.constant dense<0.000000e+00> : vector<8x128xf32>
    %11 = tpu.matmul %9, %10, %cst_9 {dimension_numbers = #tpu.dot_dimension_numbers<[1], [0], [0], [1], [0, 0, 1, 1], [], []>} : vector<8x32xbf16>, vector<32x128xbf16>, vector<8x128xf32> -> vector<8x128xf32>
    %12 = arith.mulf %11, %11 : vector<8x128xf32>
    %cst_10 = arith.constant dense<0.000000e+00> : vector<8xf32>
    %13 = vector.multi_reduction <add>, %12, %cst_10 [1] : vector<8x128xf32> to vector<8xf32>
    %14 = vector.shape_cast %13 : vector<8xf32> to vector<8x1xf32>
    %cst_11 = arith.constant 1.000000e-24 : f32
    %15 = vector.broadcast %cst_11 : f32 to vector<8x1xf32>
    %16 = arith.maximumf %14, %15 : vector<8x1xf32>
    %17 = math.rsqrt %16 : vector<8x1xf32>
    %18 = vector.broadcast %17 : vector<8x1xf32> to vector<8x128xf32>
    %19 = arith.mulf %11, %18 : vector<8x128xf32>
    %c0_12 = arith.constant 0 : index
    %c0_13 = arith.constant 0 : index
    %20 = vector.load %arg5[%c0_12, %c0_13] : memref<8x128xf32, #tpu.memory_space<vmem>>, vector<8x128xf32>
    tpu.vector_store %arg5[%c0_12, %c0_13], %19 {strides = array<i32>} : memref<8x128xf32, #tpu.memory_space<vmem>>, vector<8x128xf32>,
    return
  }
  func.func @transform_0(%arg0: i32) -> (i32, i32) {
    %c0_i32 = arith.constant 0 : i32
    %c0_i32_0 = arith.constant 0 : i32
    return %arg0, %c0_i32 : i32, i32
  }
  func.func @transform_1(%arg0: i32) -> (i32, i32) {
    %c0_i32 = arith.constant 0 : i32
    %c0_i32_0 = arith.constant 0 : i32
    %c0_i32_1 = arith.constant 0 : i32
    return %c0_i32, %c0_i32_0 : i32, i32
  }
  func.func @transform_2(%arg0: i32) -> (i32, i32) {
    %c0_i32 = arith.constant 0 : i32
    %c0_i32_0 = arith.constant 0 : i32
    %c0_i32_1 = arith.constant 0 : i32
    return %c0_i32, %c0_i32_0 : i32, i32
  }
  func.func @transform_3(%arg0: i32) -> (i32, i32) {
    %c0_i32 = arith.constant 0 : i32
    %c0_i32_0 = arith.constant 0 : i32
    %c0_i32_1 = arith.constant 0 : i32
    return %c0_i32, %c0_i32_0 : i32, i32
  }
  func.func @transform_4(%arg0: i32) -> (i32, i32) {
    %c0_i32 = arith.constant 0 : i32
    %c0_i32_0 = arith.constant 0 : i32
    return %arg0, %c0_i32 : i32, i32
  }
}

</mosaic_0001>

<bundles_post_ra>
// kernel: tpu_custom_call.1
= control target key start
LH: loop header
LB: loop body
LE: loop exit
PB: predicated region body
PF: predicated region fallthrough
CT: control target
= control target key end

     0   :  { %9 = vsyncpa [#allocation3], 0  ;;  %v42_v29 = vlaneseq  ;;  %v1232_v34 = vmov 1983009808   ;;  %vm1234_vm0 = vmmov 0   ;;  %vm812_vm1 = vcmask 261120   ;;  %s1513_s0 = inlined_call_operand.vmem [shape: f32[2,1024], index: 0, kind: input, shape index: {}]   ;;  %s1514_s1 = inlined_call_operand.vmem [shape: bf16[1024,32], index: 1, kind: input, shape index: {}]   ;;  %s1515_s2 = inlined_call_operand.vmem [shape: bf16[32,32], index: 2, kind: input, shape index: {}]   ;;  %s1516_s3 = inlined_call_operand.vmem [shape: bf16[32,128], index: 3, kind: input, shape index: {}]   ;;  %s1517_s4 = inlined_call_operand.hbm [shape: f32[2,128], index: 4, kind: output, shape index: {}]  }
   0x1   :  { %v1126_v0 = vld [vmem:[%s1514_s1 + $0x40] sm:$0xff]   ;;  %v1130_v4 = vld [vmem:[%s1514_s1 + $0x48] sm:$0xff]   ;;  %v1134_v8 = vld [vmem:[%s1514_s1 + $0x50] sm:$0xff]   ;;  %v40_v35 = vunpack.c.l.s4 %v1232_v34 }
   0x2   :  { %v1127_v1 = vld [vmem:[%s1514_s1 + $0xc0] sm:$0xff]   ;;  %1010 = vmatprep.subr.bf16.mxu0 %v1126_v0  ;;  %v1131_v5 = vld [vmem:[%s1514_s1 + $0xc8] sm:$0xff]   ;;  %v1135_v9 = vld [vmem:[%s1514_s1 + $0xd0] sm:$0xff]   ;;  %v43_v36 = vshrl.u32 %v42_v29, 7 }
   0x3   :  { %v1128_v2 = vld [vmem:[%s1514_s1] sm:$0xff]   ;;  %1032 = vmatprep.subr.bf16.mxu1 %v1127_v1  ;;  %v1132_v6 = vld [vmem:[%s1514_s1 + $0x8] sm:$0xff]   ;;  %v1136_v10 = vld [vmem:[%s1514_s1 + $0x10] sm:$0xff]   ;;  %v41_v40 = vunpack.c.0.s8 %v40_v35 }
   0x4   :  { %v1129_v3 = vld [vmem:[%s1514_s1 + $0x80] sm:$0xff]   ;;  %1011 = vmatpush3.bf16.msra.mxu0 %v1128_v2  ;;  %v1133_v7 = vld [vmem:[%s1514_s1 + $0x88] sm:$0xff]   ;;  %v1137_v11 = vld [vmem:[%s1514_s1 + $0x90] sm:$0xff]  }
   0x5   :  { %1033 = vmatpush3.bf16.msra.mxu1 %v1129_v3  ;;  %1012 = vmatprep.subr.bf16.mxu0 %v1130_v4  ;;  %v1138_v12 = vld [vmem:[%s1514_s1 + $0x58] sm:$0xff]   ;;  %v1142_v16 = vld [vmem:[%s1514_s1 + $0x60] sm:$0xff]   ;;  %v1146_v20 = vld [vmem:[%s1514_s1 + $0x68] sm:$0xff]   ;;  %v1377_v43 = vsub.s32 %v41_v40, %v43_v36 }
   0x6   :  { %1034 = vmatprep.subr.bf16.mxu1 %v1131_v5  ;;  %v1139_v13 = vld [vmem:[%s1514_s1 + $0xd8] sm:$0xff]   ;;  %v1143_v17 = vld [vmem:[%s1514_s1 + $0xe0] sm:$0xff]   ;;  %v1147_v21 = vld [vmem:[%s1514_s1 + $0xe8] sm:$0xff]  }
   0x7   :  { %v1140_v14 = vld [vmem:[%s1514_s1 + $0x18] sm:$0xff]   ;;  %v1144_v18 = vld [vmem:[%s1514_s1 + $0x20] sm:$0xff]   ;;  %v1148_v22 = vld [vmem:[%s1514_s1 + $0x28] sm:$0xff]  }
   0x8   :  { %1013 = vmatpush3.bf16.msra.mxu0 %v1132_v6  ;;  %v1141_v15 = vld [vmem:[%s1514_s1 + $0x98] sm:$0xff]   ;;  %v1145_v19 = vld [vmem:[%s1514_s1 + $0xa0] sm:$0xff]   ;;  %v1149_v23 = vld [vmem:[%s1514_s1 + $0xa8] sm:$0xff]  }
   0x9   :  { %1035 = vmatpush3.bf16.msra.mxu1 %v1133_v7  ;;  %1014 = vmatprep.subr.bf16.mxu0 %v1134_v8  ;;  %v1150_v24 = vld [vmem:[%s1514_s1 + $0x70] sm:$0xff]   ;;  %v1154_v28 = vld [vmem:[%s1514_s1 + $0x78] sm:$0xff]   ;;  %v1164_v41 = vld [vmem:[%s1514_s1 + $0x140] sm:$0xff]  }
   0xa   :  { %1036 = vmatprep.subr.bf16.mxu1 %v1135_v9  ;;  %v1151_v25 = vld [vmem:[%s1514_s1 + $0xf0] sm:$0xff]   ;;  %v1155_v30 = vld [vmem:[%s1514_s1 + $0xf8] sm:$0xff]   ;;  %v1165_v42 = vld [vmem:[%s1514_s1 + $0x1c0] sm:$0xff]  }
   0xb   :  { %v1152_v26 = vld [vmem:[%s1514_s1 + $0x30] sm:$0xff]   ;;  %v1156_v31 = vld [vmem:[%s1514_s1 + $0x38] sm:$0xff]   ;;  %v1166_v52 = vld [vmem:[%s1514_s1 + $0x100] sm:$0xff]  }
   0xc   :  { %1015 = vmatpush3.bf16.msra.mxu0 %v1136_v10  ;;  %v1153_v27 = vld [vmem:[%s1514_s1 + $0xb0] sm:$0xff]   ;;  %v1157_v32 = vld [vmem:[%s1514_s1 + $0xb8] sm:$0xff]   ;;  %v1167_v53 = vld [vmem:[%s1514_s1 + $0x180] sm:$0xff]  }
   0xd   :  { %1037 = vmatpush3.bf16.msra.mxu1 %v1137_v11  ;;  %1016 = vmatprep.subr.bf16.mxu0 %v1138_v12  ;;  %v1158_v33 = vld [vmem:[%s1513_s0] ss:$16 sps:$4 sm:$0xff]   ;;  %v1162_v38 = vld [vmem:[%s1513_s0 + $0x4] ss:$16 sps:$4 sm:$0xff]   ;;  %v1168_v58 = vld [vmem:[%s1514_s1 + $0x148] sm:$0xff]  }
   0xe   :  { %1038 = vmatprep.subr.bf16.mxu1 %v1139_v13  ;;  %v1160_v37 = vld [vmem:[%s1513_s0 + $0x20] ss:$16 sps:$4 sm:$0xff]   ;;  %v1163_v39 = vld [vmem:[%s1513_s0 + $0x24] ss:$16 sps:$4 sm:$0xff]   ;;  %v45_v44 = vrot.slane %v1158_v33, %v1377_v43  ;;  %v52_v46 = vrot.slane %v1162_v38, %v1377_v43  ;;  %v1169_v59 = vld [vmem:[%s1514_s1 + $0x1c8] sm:$0xff]  }
   0xf   :  { %v59_v45 = vrot.slane %v1160_v37, %v1377_v43  ;;  %v66_v47 = vrot.slane %v1163_v39, %v1377_v43  ;;  %v1170_v60 = vld [vmem:[%s1514_s1 + $0x108] sm:$0xff]   ;;  %v1172_v62 = vld [vmem:[%s1514_s1 + $0x150] sm:$0xff]   ;;  %v1176_v2 = vld [vmem:[%s1514_s1 + $0x158] sm:$0xff]   ;;  %v1233_v39 = vmov 0.0  }
  0x10   :  { %1017 = vmatpush3.bf16.msra.mxu0 %v1140_v14  ;;  %v1171_v61 = vld [vmem:[%s1514_s1 + $0x188] sm:$0xff]   ;;  %v1173_v63 = vld [vmem:[%s1514_s1 + $0x1d0] sm:$0xff]   ;;  %v1177_v3 = vld [vmem:[%s1514_s1 + $0x1d8] sm:$0xff]  }
  0x11   :  { %1039 = vmatpush3.bf16.msra.mxu1 %v1141_v15  ;;  %1018 = vmatprep.subr.bf16.mxu0 %v1142_v16  ;;  %v68_v48 = vcombine.high %v45_v44, %v59_v45  ;;  %v70_v49 = vcombine.high %v52_v46, %v66_v47  ;;  %v67_v50 = vcombine.low %v45_v44, %v59_v45  ;;  %v1174_v0 = vld [vmem:[%s1514_s1 + $0x110] sm:$0xff]   ;;  %v1178_v4 = vld [vmem:[%s1514_s1 + $0x118] sm:$0xff]   ;;  %v1180_v6 = vld [vmem:[%s1514_s1 + $0x160] sm:$0xff]  }
  0x12   :  { %1040 = vmatprep.subr.bf16.mxu1 %v1143_v17  ;;  %v69_v51 = vcombine.low %v52_v46, %v66_v47  ;;  %v1175_v1 = vld [vmem:[%s1514_s1 + $0x190] sm:$0xff]   ;;  %v1179_v5 = vld [vmem:[%s1514_s1 + $0x198] sm:$0xff]   ;;  %v1181_v7 = vld [vmem:[%s1514_s1 + $0x1e0] sm:$0xff]  }
  0x13   :  { %v116_v54 = vpack.c.bf16 %v68_v48, %v68_v48  ;;  %v118_v55 = vpack.c.bf16 %v70_v49, %v70_v49  ;;  %v115_v56 = vpack.c.bf16 %v67_v50, %v67_v50  ;;  %v1182_v8 = vld [vmem:[%s1514_s1 + $0x120] sm:$0xff]   ;;  %v1184_v10 = vld [vmem:[%s1514_s1 + $0x168] sm:$0xff]   ;;  %v1188_v14 = vld [vmem:[%s1514_s1 + $0x170] sm:$0xff]  }
  0x14   :  { %1019 = vmatpush3.bf16.msra.mxu0 %v1144_v18  ;;  %v117_v57 = vpack.c.bf16 %v69_v51, %v69_v51  ;;  %v1183_v9 = vld [vmem:[%s1514_s1 + $0x1a0] sm:$0xff]   ;;  %v1185_v11 = vld [vmem:[%s1514_s1 + $0x1e8] sm:$0xff]   ;;  %v1189_v15 = vld [vmem:[%s1514_s1 + $0x1f0] sm:$0xff]  }
  0x15   :  { %1041 = vmatpush3.bf16.msra.mxu1 %v1145_v19  ;;  %1020 = vmatprep.subr.bf16.mxu0 %v1146_v20  ;;  %v1186_v12 = vld [vmem:[%s1514_s1 + $0x128] sm:$0xff]   ;;  %v1190_v16 = vld [vmem:[%s1514_s1 + $0x130] sm:$0xff]   ;;  %v1192_v18 = vld [vmem:[%s1514_s1 + $0x178] sm:$0xff]  }
  0x16   :  { %1042 = vmatprep.subr.bf16.mxu1 %v1147_v21  ;;  %667 = vmatprep.mubr.bf16.mxu0 %v116_v54  ;;  %v1187_v13 = vld [vmem:[%s1514_s1 + $0x1a8] sm:$0xff]   ;;  %v1191_v17 = vld [vmem:[%s1514_s1 + $0x1b0] sm:$0xff]   ;;  %v1193_v19 = vld [vmem:[%s1514_s1 + $0x1f8] sm:$0xff]  }
  0x17   :  { %707 = vmatprep.mubr.bf16.mxu1 %v118_v55  ;;  %v1196_v20 = vld [vmem:[%s1513_s0 + $0x8] ss:$16 sps:$4 sm:$0xff]   ;;  %v1202_v38 = vld [vmem:[%s1515_s2] sm:$0xff]  }
  0x18   :  { %1021 = vmatpush3.bf16.msra.mxu0 %v1148_v22  ;;  %v1198_v21 = vld [vmem:[%s1513_s0 + $0x28] ss:$16 sps:$4 sm:$0xff]  }
  0x19   :  { %1043 = vmatpush3.bf16.msra.mxu1 %v1149_v23  ;;  %1022 = vmatprep.subr.bf16.mxu0 %v1150_v24  ;;  %v1194_v22 = vld [vmem:[%s1514_s1 + $0x138] sm:$0xff]   ;;  %v1203_v40 = vld [vmem:[%s1515_s2 + $0x8] sm:$0xff]  }
  0x1a   :  { %1044 = vmatprep.subr.bf16.mxu1 %v1151_v25  ;;  %v1195_v23 = vld [vmem:[%s1514_s1 + $0x1b8] sm:$0xff]  }
  0x1b   :  { %v1200_v24 = vld [vmem:[%s1513_s0 + $0xc] ss:$16 sps:$4 sm:$0xff]  }
  0x1c   :  { %1023 = vmatpush3.bf16.msra.mxu0 %v1152_v26  ;;  %v1201_v25 = vld [vmem:[%s1513_s0 + $0x2c] ss:$16 sps:$4 sm:$0xff]   ;;  %v81_v26 = vrot.slane %v1196_v20, %v1377_v43 }
  0x1d   :  { %1045 = vmatpush3.bf16.msra.mxu1 %v1153_v27  ;;  %1024 = vmatprep.subr.bf16.mxu0 %v1154_v28  ;;  %v95_v27 = vrot.slane %v1198_v21, %v1377_v43  ;;  %v88_v28 = vrot.slane %v1200_v24, %v1377_v43  ;;  %v102_v29 = vrot.slane %v1201_v25, %v1377_v43 }
  0x1e   :  { %1046 = vmatprep.subr.bf16.mxu1 %v1155_v30 }
  0x1f   :  { %v104_v30 = vcombine.high %v81_v26, %v95_v27  ;;  %v105_v33 = vcombine.low %v88_v28, %v102_v29 }
  0x20   :  { %1025 = vmatpush3.bf16.msra.mxu0 %v1156_v31  ;;  %v103_v31 = vcombine.low %v81_v26, %v95_v27 }
  0x21   :  { %1047 = vmatpush3.bf16.msra.mxu1 %v1157_v32  ;;  %1054 = vmatprep.subr.bf16.mxu0 %v1164_v41  ;;  %v106_v32 = vcombine.high %v88_v28, %v102_v29  ;;  %v120_v34 = vpack.c.bf16 %v104_v30, %v104_v30  ;;  %v121_v37 = vpack.c.bf16 %v105_v33, %v105_v33  ;;  %v1204_v41 = vld [vmem:[%s1516_s3] sm:$0xff]  }
  0x22   :  { %1076 = vmatprep.subr.bf16.mxu1 %v1165_v42  ;;  %v119_v35 = vpack.c.bf16 %v103_v31, %v103_v31 }
  0x23   :  { %668 = vmatmul.mubr.bf16.vlgmr.msra.gmra.mrb[0].mxu0 %v115_v56  ;;  %v122_v36 = vpack.c.bf16 %v106_v32, %v106_v32 }
  0x24   :  { %708 = vmatmul.mubr.bf16.vlgmr.msra.gmra.mrb[0].mxu1 %v117_v57  ;;  %1055 = vmatpush3.bf16.msra.mxu0 %v1166_v52 }
  0x25   :  { %1077 = vmatpush3.bf16.msra.mxu1 %v1167_v53  ;;  %1056 = vmatprep.subr.bf16.mxu0 %v1168_v58 }
  0x26   :  { %1078 = vmatprep.subr.bf16.mxu1 %v1169_v59  ;;  %747 = vmatprep.mubr.bf16.mxu0 %v120_v34 }
  0x27   :  { %787 = vmatprep.mubr.bf16.mxu1 %v122_v36 }
  0x28   :  { %1057 = vmatpush3.bf16.msra.mxu0 %v1170_v60 }
  0x29   :  { %1079 = vmatpush3.bf16.msra.mxu1 %v1171_v61  ;;  %1058 = vmatprep.subr.bf16.mxu0 %v1172_v62 }
  0x2a   :  { %1080 = vmatprep.subr.bf16.mxu1 %v1173_v63 }
  0x2c   :  { %1059 = vmatpush3.bf16.msra.mxu0 %v1174_v0 }
  0x2d   :  { %1081 = vmatpush3.bf16.msra.mxu1 %v1175_v1  ;;  %1060 = vmatprep.subr.bf16.mxu0 %v1176_v2  ;;  %v1205_v2 = vld [vmem:[%s1516_s3 + $0x8] sm:$0xff]  }
  0x2e   :  { %1082 = vmatprep.subr.bf16.mxu1 %v1177_v3 }
  0x30   :  { %1061 = vmatpush3.bf16.msra.mxu0 %v1178_v4 }
  0x31   :  { %1083 = vmatpush3.bf16.msra.mxu1 %v1179_v5  ;;  %1062 = vmatprep.subr.bf16.mxu0 %v1180_v6 }
  0x32   :  { %1084 = vmatprep.subr.bf16.mxu1 %v1181_v7 }
  0x34   :  { %1063 = vmatpush3.bf16.msra.mxu0 %v1182_v8 }
  0x35   :  { %1085 = vmatpush3.bf16.msra.mxu1 %v1183_v9  ;;  %1064 = vmatprep.subr.bf16.mxu0 %v1184_v10 }
  0x36   :  { %1086 = vmatprep.subr.bf16.mxu1 %v1185_v11 }
  0x38   :  { %1065 = vmatpush3.bf16.msra.mxu0 %v1186_v12 }
  0x39   :  { %1087 = vmatpush3.bf16.msra.mxu1 %v1187_v13  ;;  %1066 = vmatprep.subr.bf16.mxu0 %v1188_v14 }
  0x3a   :  { %1088 = vmatprep.subr.bf16.mxu1 %v1189_v15 }
  0x3c   :  { %1067 = vmatpush3.bf16.msra.mxu0 %v1190_v16 }
  0x3d   :  { %1089 = vmatpush3.bf16.msra.mxu1 %v1191_v17  ;;  %1068 = vmatprep.subr.bf16.mxu0 %v1192_v18 }
  0x3e   :  { %1090 = vmatprep.subr.bf16.mxu1 %v1193_v19 }
  0x40   :  { %1069 = vmatpush3.bf16.msra.mxu0 %v1194_v22 }
  0x41   :  { %1091 = vmatpush3.bf16.msra.mxu1 %v1195_v23  ;;  %1104 = vmatprep.subr.bf16.mxu0 %v1233_v39 }
  0x42   :  { %1112 = vmatprep.subr.bf16.mxu1 %v1233_v39 }
  0x43   :  { %748 = vmatmul.mubr.bf16.vlgmr.msra.gmra.mrb[4].mxu0 %v119_v35 }
  0x44   :  { %788 = vmatmul.mubr.bf16.vlgmr.msra.gmra.mrb[4].mxu1 %v121_v37  ;;  %1105 = vmatpush3.bf16.msra.mxu0 %v1202_v38 }
  0x45   :  { %1106 = vmatprep.subr.bf16.mxu0 %v1233_v39  ;;  %1108 = vmatprep.mubr.msk.bf16.mxu0 %vm1234_vm0, %v1233_v39 }
  0x46   :  { %1116 = vmatprep.mubr.msk.bf16.mxu1 %vm1234_vm0, %v1233_v39  ;;  %1113 = vmatpush3.bf16.msra.mxu1 %v1204_v41 }
  0x47   :  { %1114 = vmatprep.subr.bf16.mxu1 %v1233_v39 }
  0x48   :  { %1107 = vmatpush3.bf16.msra.mxu0 %v1203_v40 }
  0x4a   :  { %1115 = vmatpush3.bf16.msra.mxu1 %v1205_v2 }
  0xf6   :  { %v1026_v42 = vpop.f32.mrb[0].mxu0 }
  0xf7   :  { %v1048_v43 = vpop.f32.mrb[0].mxu1  ;;  %v1027_v44 = vpop.f32.mrb[1].mxu0 }
  0xf8   :  { %v1049_v45 = vpop.f32.mrb[1].mxu1  ;;  %v1028_v46 = vadd.f32 %v1027_v44, %v1026_v42  ;;  %v1029_v48 = vpop.f32.mrb[2].mxu0 }
  0xf9   :  { %v1050_v47 = vadd.f32 %v1049_v45, %v1048_v43  ;;  %v1051_v49 = vpop.f32.mrb[2].mxu1  ;;  %v1030_v50 = vpop.f32.mrb[3].mxu0 }
  0xfa   :  { %v1052_v51 = vpop.f32.mrb[3].mxu1 }
  0xfb   :  { %v710_v52 = vadd.f32 %v1050_v47, %v1028_v46 }
 0x116   :  { %v1070_v53 = vpop.f32.mrb[4].mxu0 }
 0x117   :  { %v1092_v54 = vpop.f32.mrb[4].mxu1  ;;  %v1071_v55 = vpop.f32.mrb[5].mxu0 }
 0x118   :  { %v1093_v56 = vpop.f32.mrb[5].mxu1  ;;  %v1072_v57 = vadd.f32 %v1071_v55, %v1070_v53  ;;  %v1073_v59 = vpop.f32.mrb[6].mxu0 }
 0x119   :  { %v1094_v58 = vadd.f32 %v1093_v56, %v1092_v54  ;;  %v1095_v60 = vpop.f32.mrb[6].mxu1  ;;  %v1074_v61 = vpop.f32.mrb[7].mxu0 }
 0x11a   :  { %v1096_v62 = vpop.f32.mrb[7].mxu1  ;;  %v750_v63 = vadd.f32 %v1072_v57, %v710_v52 }
 0x11c   :  { %v790_v0 = vadd.f32 %v1094_v58, %v750_v63 }
 0x11e   :  { %v795_v1 = vpack.c.bf16 %v790_v0, %v790_v0 }
 0x120   :  { %1109 = vmatmul.mubr.msk.bf16.vlgmr.msra.gmra.mrb[8].mxu0 %vm812_vm1, %v795_v1 }
 0x1f3   :  { %v850_v3 = vpop.f32.mrb[8].mxu0 }
 0x1f4   :  { %v856_v4 = vmax.f32 %v850_v3, 0.0  ;;  %v1110_v5 = vpop.f32.mrb[9].mxu0 }
 0x1f5   :  { %v853_v6 = vpop.f32.mrb[10].mxu0 }
 0x1f6   :  { %v857_v7 = vpack.c.bf16 %v856_v4, %v856_v4  ;;  %v1111_v8 = vpop.f32.mrb[11].mxu0 }
 0x1f8   :  { %1117 = vmatmul.mubr.msk.bf16.vlgmr.msra.gmra.mrb[8].mxu1 %vm812_vm1, %v857_v7 }
 0x2cb   :  { %v911_v9 = vpop.f32.mrb[8].mxu1 }
 0x2cc   :  { %v1118_v10 = vpop.f32.mrb[9].mxu1  ;;  %v917_v11 = vmul.f32 %v911_v9, %v911_v9 }
 0x2cd   :  { %v914_v12 = vpop.f32.mrb[10].mxu1 }
 0x2ce   :  { %v1119_v13 = vpop.f32.mrb[11].mxu1  ;;  %918 = vadd.xlane.f32.xlu0 %v917_v11 }
 0x35b   :  { %v919_v14 = vpop.xlane.xlu0 %918 }
 0x35c   :  { %v920_v15 = vmax.f32 %v919_v14, 1e-24 }
 0x35e   :  { %1206 = vrsqrt.f32 %v920_v15 }
 0x368   :  { %v1207_v16 = vpop.eup %1206 }
 0x369   :  { %v922_v17 = vmul.f32 %v1207_v16, %v911_v9 }
 0x36b   :  { %923 = vst [vmem:[#allocation2] sm:$0xff] %v922_v17 }
 0x36c   :  { %928 = vsyncadd [#allocation3], 96  ;;  %s1235_s3 = smov [#allocation2]  }
 0x36d   :  { %s929_s8 = sshll.u32 %s1235_s3, 4  ;;  %s930_s8 = int_to_ptr.vmem [resolvable:$true] %s929_s8 }
 0x36e   :  { %s1208_s9 = scalar_lea.vmem %s930_s8, 32  ;;  %s1212_s10 = scalar_lea.vmem %s930_s8, 128 }
 0x36f   :  { %p1209_p0 = scmp.ne.s32.totalorder %s930_s8, %s1208_s9  ;;  %p1213_p1 = scmp.lt.s32.totalorder %s930_s8, %s930_s8 }
 0x370   :  { %p1214_p2 = scmp.lt.s32.totalorder %s1212_s10, %s1208_s9 }
 0x372   :  { %p1215_p3 = por %p1214_p2, %p1213_p1 }
 0x374   :  { %p1216_p4 = pnand %p1215_p3, %p1209_p0 }
 0x376   :  { %1219 = shalt.err (!%p1216_p4)
}
 0x377   :  { %s1220_s13 = scalar_lea.hbm %s1517_s4, 32 }
 0x378   :  { %p1221_p5 = scmp.ne.s32.totalorder %s1517_s4, %s1220_s13  ;;  %p1224_p6 = scmp.lt.u32.totalorder %s1220_s13, %s1517_s4 }
 0x37a   :  { %p1226_p7 = pnand %p1224_p6, %p1221_p5 }
 0x37c   :  { %1229 = shalt.err (!%p1226_p7)
}
 0x37d   :  { %s1236_s18 = smov 32   ;;  %s1237_s19 = smov 2  }
 0x37e   :  { %935 = dma.vmem_to_hbm [thread:$0]  %s930_s8, 32, %s1517_s4, [#allocation3], %s1236_s18, %s1236_s18, %s1237_s19  }
 0x37f   :  { %1230 = dma.done.wait [#allocation3], 128  }
 0x380   :  { %1231 = vsyncadd [#allocation3], 4294967168 }
 0x381   :  { %939 = vsyncpa [#allocation3], 1 }

// kernel: tpu_custom_call.1
= control target key start
LH: loop header
LB: loop body
LE: loop exit
PB: predicated region body
PF: predicated region fallthrough
CT: control target
= control target key end

     0   :  { %9 = vsyncpa [#allocation3], 0  ;;  %v42_v29 = vlaneseq  ;;  %v1232_v34 = vmov 1983009808   ;;  %vm1234_vm0 = vmmov 0   ;;  %vm812_vm1 = vcmask 261120   ;;  %s1513_s0 = inlined_call_operand.vmem [shape: f32[2,1024], index: 0, kind: input, shape index: {}]   ;;  %s1514_s1 = inlined_call_operand.vmem [shape: bf16[1024,32], index: 1, kind: input, shape index: {}]   ;;  %s1515_s2 = inlined_call_operand.vmem [shape: bf16[32,32], index: 2, kind: input, shape index: {}]   ;;  %s1516_s3 = inlined_call_operand.vmem [shape: bf16[32,128], index: 3, kind: input, shape index: {}]   ;;  %s1517_s4 = inlined_call_operand.hbm [shape: f32[2,128], index: 4, kind: output, shape index: {}]  }
   0x1   :  { %v1126_v0 = vld [vmem:[%s1514_s1 + $0x40] sm:$0xff]   ;;  %v1130_v4 = vld [vmem:[%s1514_s1 + $0x48] sm:$0xff]   ;;  %v1134_v8 = vld [vmem:[%s1514_s1 + $0x50] sm:$0xff]   ;;  %v40_v35 = vunpack.c.l.s4 %v1232_v34 }
   0x2   :  { %v1127_v1 = vld [vmem:[%s1514_s1 + $0xc0] sm:$0xff]   ;;  %1010 = vmatprep.subr.bf16.mxu0 %v1126_v0  ;;  %v1131_v5 = vld [vmem:[%s1514_s1 + $0xc8] sm:$0xff]   ;;  %v1135_v9 = vld [vmem:[%s1514_s1 + $0xd0] sm:$0xff]   ;;  %v43_v36 = vshrl.u32 %v42_v29, 7 }
   0x3   :  { %v1128_v2 = vld [vmem:[%s1514_s1] sm:$0xff]   ;;  %1032 = vmatprep.subr.bf16.mxu1 %v1127_v1  ;;  %v1132_v6 = vld [vmem:[%s1514_s1 + $0x8] sm:$0xff]   ;;  %v1136_v10 = vld [vmem:[%s1514_s1 + $0x10] sm:$0xff]   ;;  %v41_v40 = vunpack.c.0.s8 %v40_v35 }
   0x4   :  { %v1129_v3 = vld [vmem:[%s1514_s1 + $0x80] sm:$0xff]   ;;  %1011 = vmatpush3.bf16.msra.mxu0 %v1128_v2  ;;  %v1133_v7 = vld [vmem:[%s1514_s1 + $0x88] sm:$0xff]   ;;  %v1137_v11 = vld [vmem:[%s1514_s1 + $0x90] sm:$0xff]  }
   0x5   :  { %1033 = vmatpush3.bf16.msra.mxu1 %v1129_v3  ;;  %1012 = vmatprep.subr.bf16.mxu0 %v1130_v4  ;;  %v1138_v12 = vld [vmem:[%s1514_s1 + $0x58] sm:$0xff]   ;;  %v1142_v16 = vld [vmem:[%s1514_s1 + $0x60] sm:$0xff]   ;;  %v1146_v20 = vld [vmem:[%s1514_s1 + $0x68] sm:$0xff]   ;;  %v1377_v43 = vsub.s32 %v41_v40, %v43_v36 }
   0x6   :  { %1034 = vmatprep.subr.bf16.mxu1 %v1131_v5  ;;  %v1139_v13 = vld [vmem:[%s1514_s1 + $0xd8] sm:$0xff]   ;;  %v1143_v17 = vld [vmem:[%s1514_s1 + $0xe0] sm:$0xff]   ;;  %v1147_v21 = vld [vmem:[%s1514_s1 + $0xe8] sm:$0xff]  }
   0x7   :  { %v1140_v14 = vld [vmem:[%s1514_s1 + $0x18] sm:$0xff]   ;;  %v1144_v18 = vld [vmem:[%s1514_s1 + $0x20] sm:$0xff]   ;;  %v1148_v22 = vld [vmem:[%s1514_s1 + $0x28] sm:$0xff]  }
   0x8   :  { %1013 = vmatpush3.bf16.msra.mxu0 %v1132_v6  ;;  %v1141_v15 = vld [vmem:[%s1514_s1 + $0x98] sm:$0xff]   ;;  %v1145_v19 = vld [vmem:[%s1514_s1 + $0xa0] sm:$0xff]   ;;  %v1149_v23 = vld [vmem:[%s1514_s1 + $0xa8] sm:$0xff]  }
   0x9   :  { %1035 = vmatpush3.bf16.msra.mxu1 %v1133_v7  ;;  %1014 = vmatprep.subr.bf16.mxu0 %v1134_v8  ;;  %v1150_v24 = vld [vmem:[%s1514_s1 + $0x70] sm:$0xff]   ;;  %v1154_v28 = vld [vmem:[%s1514_s1 + $0x78] sm:$0xff]   ;;  %v1164_v41 = vld [vmem:[%s1514_s1 + $0x140] sm:$0xff]  }
   0xa   :  { %1036 = vmatprep.subr.bf16.mxu1 %v1135_v9  ;;  %v1151_v25 = vld [vmem:[%s1514_s1 + $0xf0] sm:$0xff]   ;;  %v1155_v30 = vld [vmem:[%s1514_s1 + $0xf8] sm:$0xff]   ;;  %v1165_v42 = vld [vmem:[%s1514_s1 + $0x1c0] sm:$0xff]  }
   0xb   :  { %v1152_v26 = vld [vmem:[%s1514_s1 + $0x30] sm:$0xff]   ;;  %v1156_v31 = vld [vmem:[%s1514_s1 + $0x38] sm:$0xff]   ;;  %v1166_v52 = vld [vmem:[%s1514_s1 + $0x100] sm:$0xff]  }
   0xc   :  { %1015 = vmatpush3.bf16.msra.mxu0 %v1136_v10  ;;  %v1153_v27 = vld [vmem:[%s1514_s1 + $0xb0] sm:$0xff]   ;;  %v1157_v32 = vld [vmem:[%s1514_s1 + $0xb8] sm:$0xff]   ;;  %v1167_v53 = vld [vmem:[%s1514_s1 + $0x180] sm:$0xff]  }
   0xd   :  { %1037 = vmatpush3.bf16.msra.mxu1 %v1137_v11  ;;  %1016 = vmatprep.subr.bf16.mxu0 %v1138_v12  ;;  %v1158_v33 = vld [vmem:[%s1513_s0] ss:$16 sps:$4 sm:$0xff]   ;;  %v1162_v38 = vld [vmem:[%s1513_s0 + $0x4] ss:$16 sps:$4 sm:$0xff]   ;;  %v1168_v58 = vld [vmem:[%s1514_s1 + $0x148] sm:$0xff]  }
   0xe   :  { %1038 = vmatprep.subr.bf16.mxu1 %v1139_v13  ;;  %v1160_v37 = vld [vmem:[%s1513_s0 + $0x20] ss:$16 sps:$4 sm:$0xff]   ;;  %v1163_v39 = vld [vmem:[%s1513_s0 + $0x24] ss:$16 sps:$4 sm:$0xff]   ;;  %v45_v44 = vrot.slane %v1158_v33, %v1377_v43  ;;  %v52_v46 = vrot.slane %v1162_v38, %v1377_v43  ;;  %v1169_v59 = vld [vmem:[%s1514_s1 + $0x1c8] sm:$0xff]  }
   0xf   :  { %v59_v45 = vrot.slane %v1160_v37, %v1377_v43  ;;  %v66_v47 = vrot.slane %v1163_v39, %v1377_v43  ;;  %v1170_v60 = vld [vmem:[%s1514_s1 + $0x108] sm:$0xff]   ;;  %v1172_v62 = vld [vmem:[%s1514_s1 + $0x150] sm:$0xff]   ;;  %v1176_v2 = vld [vmem:[%s1514_s1 + $0x158] sm:$0xff]   ;;  %v1233_v39 = vmov 0.0  }
  0x10   :  { %1017 = vmatpush3.bf16.msra.mxu0 %v1140_v14  ;;  %v1171_v61 = vld [vmem:[%s1514_s1 + $0x188] sm:$0xff]   ;;  %v1173_v63 = vld [vmem:[%s1514_s1 + $0x1d0] sm:$0xff]   ;;  %v1177_v3 = vld [vmem:[%s1514_s1 + $0x1d8] sm:$0xff]  }
  0x11   :  { %1039 = vmatpush3.bf16.msra.mxu1 %v1141_v15  ;;  %1018 = vmatprep.subr.bf16.mxu0 %v1142_v16  ;;  %v68_v48 = vcombine.high %v45_v44, %v59_v45  ;;  %v70_v49 = vcombine.high %v52_v46, %v66_v47  ;;  %v67_v50 = vcombine.low %v45_v44, %v59_v45  ;;  %v1174_v0 = vld [vmem:[%s1514_s1 + $0x110] sm:$0xff]   ;;  %v1178_v4 = vld [vmem:[%s1514_s1 + $0x118] sm:$0xff]   ;;  %v1180_v6 = vld [vmem:[%s1514_s1 + $0x160] sm:$0xff]  }
  0x12   :  { %1040 = vmatprep.subr.bf16.mxu1 %v1143_v17  ;;  %v69_v51 = vcombine.low %v52_v46, %v66_v47  ;;  %v1175_v1 = vld [vmem:[%s1514_s1 + $0x190] sm:$0xff]   ;;  %v1179_v5 = vld [vmem:[%s1514_s1 + $0x198] sm:$0xff]   ;;  %v1181_v7 = vld [vmem:[%s1514_s1 + $0x1e0] sm:$0xff]  }
  0x13   :  { %v116_v54 = vpack.c.bf16 %v68_v48, %v68_v48  ;;  %v118_v55 = vpack.c.bf16 %v70_v49, %v70_v49  ;;  %v115_v56 = vpack.c.bf16 %v67_v50, %v67_v50  ;;  %v1182_v8 = vld [vmem:[%s1514_s1 + $0x120] sm:$0xff]   ;;  %v1184_v10 = vld [vmem:[%s1514_s1 + $0x168] sm:$0xff]   ;;  %v1188_v14 = vld [vmem:[%s1514_s1 + $0x170] sm:$0xff]  }
  0x14   :  { %1019 = vmatpush3.bf16.msra.mxu0 %v1144_v18  ;;  %v117_v57 = vpack.c.bf16 %v69_v51, %v69_v51  ;;  %v1183_v9 = vld [vmem:[%s1514_s1 + $0x1a0] sm:$0xff]   ;;  %v1185_v11 = vld [vmem:[%s1514_s1 + $0x1e8] sm:$0xff]   ;;  %v1189_v15 = vld [vmem:[%s1514_s1 + $0x1f0] sm:$0xff]  }
  0x15   :  { %1041 = vmatpush3.bf16.msra.mxu1 %v1145_v19  ;;  %1020 = vmatprep.subr.bf16.mxu0 %v1146_v20  ;;  %v1186_v12 = vld [vmem:[%s1514_s1 + $0x128] sm:$0xff]   ;;  %v1190_v16 = vld [vmem:[%s1514_s1 + $0x130] sm:$0xff]   ;;  %v1192_v18 = vld [vmem:[%s1514_s1 + $0x178] sm:$0xff]  }
  0x16   :  { %1042 = vmatprep.subr.bf16.mxu1 %v1147_v21  ;;  %667 = vmatprep.mubr.bf16.mxu0 %v116_v54  ;;  %v1187_v13 = vld [vmem:[%s1514_s1 + $0x1a8] sm:$0xff]   ;;  %v1191_v17 = vld [vmem:[%s1514_s1 + $0x1b0] sm:$0xff]   ;;  %v1193_v19 = vld [vmem:[%s1514_s1 + $0x1f8] sm:$0xff]  }
  0x17   :  { %707 = vmatprep.mubr.bf16.mxu1 %v118_v55  ;;  %v1196_v20 = vld [vmem:[%s1513_s0 + $0x8] ss:$16 sps:$4 sm:$0xff]   ;;  %v1202_v38 = vld [vmem:[%s1515_s2] sm:$0xff]  }
  0x18   :  { %1021 = vmatpush3.bf16.msra.mxu0 %v1148_v22  ;;  %v1198_v21 = vld [vmem:[%s1513_s0 + $0x28] ss:$16 sps:$4 sm:$0xff]  }
  0x19   :  { %1043 = vmatpush3.bf16.msra.mxu1 %v1149_v23  ;;  %1022 = vmatprep.subr.bf16.mxu0 %v1150_v24  ;;  %v1194_v22 = vld [vmem:[%s1514_s1 + $0x138] sm:$0xff]   ;;  %v1203_v40 = vld [vmem:[%s1515_s2 + $0x8] sm:$0xff]  }
  0x1a   :  { %1044 = vmatprep.subr.bf16.mxu1 %v1151_v25  ;;  %v1195_v23 = vld [vmem:[%s1514_s1 + $0x1b8] sm:$0xff]  }
  0x1b   :  { %v1200_v24 = vld [vmem:[%s1513_s0 + $0xc] ss:$16 sps:$4 sm:$0xff]  }
  0x1c   :  { %1023 = vmatpush3.bf16.msra.mxu0 %v1152_v26  ;;  %v1201_v25 = vld [vmem:[%s1513_s0 + $0x2c] ss:$16 sps:$4 sm:$0xff]   ;;  %v81_v26 = vrot.slane %v1196_v20, %v1377_v43 }
  0x1d   :  { %1045 = vmatpush3.bf16.msra.mxu1 %v1153_v27  ;;  %1024 = vmatprep.subr.bf16.mxu0 %v1154_v28  ;;  %v95_v27 = vrot.slane %v1198_v21, %v1377_v43  ;;  %v88_v28 = vrot.slane %v1200_v24, %v1377_v43  ;;  %v102_v29 = vrot.slane %v1201_v25, %v1377_v43 }
  0x1e   :  { %1046 = vmatprep.subr.bf16.mxu1 %v1155_v30 }
  0x1f   :  { %v104_v30 = vcombine.high %v81_v26, %v95_v27  ;;  %v105_v33 = vcombine.low %v88_v28, %v102_v29 }
  0x20   :  { %1025 = vmatpush3.bf16.msra.mxu0 %v1156_v31  ;;  %v103_v31 = vcombine.low %v81_v26, %v95_v27 }
  0x21   :  { %1047 = vmatpush3.bf16.msra.mxu1 %v1157_v32  ;;  %1054 = vmatprep.subr.bf16.mxu0 %v1164_v41  ;;  %v106_v32 = vcombine.high %v88_v28, %v102_v29  ;;  %v120_v34 = vpack.c.bf16 %v104_v30, %v104_v30  ;;  %v121_v37 = vpack.c.bf16 %v105_v33, %v105_v33  ;;  %v1204_v41 = vld [vmem:[%s1516_s3] sm:$0xff]  }
  0x22   :  { %1076 = vmatprep.subr.bf16.mxu1 %v1165_v42  ;;  %v119_v35 = vpack.c.bf16 %v103_v31, %v103_v31 }
  0x23   :  { %668 = vmatmul.mubr.bf16.vlgmr.msra.gmra.mrb[0].mxu0 %v115_v56  ;;  %v122_v36 = vpack.c.bf16 %v106_v32, %v106_v32 }
  0x24   :  { %708 = vmatmul.mubr.bf16.vlgmr.msra.gmra.mrb[0].mxu1 %v117_v57  ;;  %1055 = vmatpush3.bf16.msra.mxu0 %v1166_v52 }
  0x25   :  { %1077 = vmatpush3.bf16.msra.mxu1 %v1167_v53  ;;  %1056 = vmatprep.subr.bf16.mxu0 %v1168_v58 }
  0x26   :  { %1078 = vmatprep.subr.bf16.mxu1 %v1169_v59  ;;  %747 = vmatprep.mubr.bf16.mxu0 %v120_v34 }
  0x27   :  { %787 = vmatprep.mubr.bf16.mxu1 %v122_v36 }
  0x28   :  { %1057 = vmatpush3.bf16.msra.mxu0 %v1170_v60 }
  0x29   :  { %1079 = vmatpush3.bf16.msra.mxu1 %v1171_v61  ;;  %1058 = vmatprep.subr.bf16.mxu0 %v1172_v62 }
  0x2a   :  { %1080 = vmatprep.subr.bf16.mxu1 %v1173_v63 }
  0x2c   :  { %1059 = vmatpush3.bf16.msra.mxu0 %v1174_v0 }
  0x2d   :  { %1081 = vmatpush3.bf16.msra.mxu1 %v1175_v1  ;;  %1060 = vmatprep.subr.bf16.mxu0 %v1176_v2  ;;  %v1205_v2 = vld [vmem:[%s1516_s3 + $0x8] sm:$0xff]  }
  0x2e   :  { %1082 = vmatprep.subr.bf16.mxu1 %v1177_v3 }
  0x30   :  { %1061 = vmatpush3.bf16.msra.mxu0 %v1178_v4 }
  0x31   :  { %1083 = vmatpush3.bf16.msra.mxu1 %v1179_v5  ;;  %1062 = vmatprep.subr.bf16.mxu0 %v1180_v6 }
  0x32   :  { %1084 = vmatprep.subr.bf16.mxu1 %v1181_v7 }
  0x34   :  { %1063 = vmatpush3.bf16.msra.mxu0 %v1182_v8 }
  0x35   :  { %1085 = vmatpush3.bf16.msra.mxu1 %v1183_v9  ;;  %1064 = vmatprep.subr.bf16.mxu0 %v1184_v10 }
  0x36   :  { %1086 = vmatprep.subr.bf16.mxu1 %v1185_v11 }
  0x38   :  { %1065 = vmatpush3.bf16.msra.mxu0 %v1186_v12 }
  0x39   :  { %1087 = vmatpush3.bf16.msra.mxu1 %v1187_v13  ;;  %1066 = vmatprep.subr.bf16.mxu0 %v1188_v14 }
  0x3a   :  { %1088 = vmatprep.subr.bf16.mxu1 %v1189_v15 }
  0x3c   :  { %1067 = vmatpush3.bf16.msra.mxu0 %v1190_v16 }
  0x3d   :  { %1089 = vmatpush3.bf16.msra.mxu1 %v1191_v17  ;;  %1068 = vmatprep.subr.bf16.mxu0 %v1192_v18 }
  0x3e   :  { %1090 = vmatprep.subr.bf16.mxu1 %v1193_v19 }
  0x40   :  { %1069 = vmatpush3.bf16.msra.mxu0 %v1194_v22 }
  0x41   :  { %1091 = vmatpush3.bf16.msra.mxu1 %v1195_v23  ;;  %1104 = vmatprep.subr.bf16.mxu0 %v1233_v39 }
  0x42   :  { %1112 = vmatprep.subr.bf16.mxu1 %v1233_v39 }
  0x43   :  { %748 = vmatmul.mubr.bf16.vlgmr.msra.gmra.mrb[4].mxu0 %v119_v35 }
  0x44   :  { %788 = vmatmul.mubr.bf16.vlgmr.msra.gmra.mrb[4].mxu1 %v121_v37  ;;  %1105 = vmatpush3.bf16.msra.mxu0 %v1202_v38 }
  0x45   :  { %1106 = vmatprep.subr.bf16.mxu0 %v1233_v39  ;;  %1108 = vmatprep.mubr.msk.bf16.mxu0 %vm1234_vm0, %v1233_v39 }
  0x46   :  { %1116 = vmatprep.mubr.msk.bf16.mxu1 %vm1234_vm0, %v1233_v39  ;;  %1113 = vmatpush3.bf16.msra.mxu1 %v1204_v41 }
  0x47   :  { %1114 = vmatprep.subr.bf16.mxu1 %v1233_v39 }
  0x48   :  { %1107 = vmatpush3.bf16.msra.mxu0 %v1203_v40 }
  0x4a   :  { %1115 = vmatpush3.bf16.msra.mxu1 %v1205_v2 }
  0xf6   :  { %v1026_v42 = vpop.f32.mrb[0].mxu0 }
  0xf7   :  { %v1048_v43 = vpop.f32.mrb[0].mxu1  ;;  %v1027_v44 = vpop.f32.mrb[1].mxu0 }
  0xf8   :  { %v1049_v45 = vpop.f32.mrb[1].mxu1  ;;  %v1028_v46 = vadd.f32 %v1027_v44, %v1026_v42  ;;  %v1029_v48 = vpop.f32.mrb[2].mxu0 }
  0xf9   :  { %v1050_v47 = vadd.f32 %v1049_v45, %v1048_v43  ;;  %v1051_v49 = vpop.f32.mrb[2].mxu1  ;;  %v1030_v50 = vpop.f32.mrb[3].mxu0 }
  0xfa   :  { %v1052_v51 = vpop.f32.mrb[3].mxu1 }
  0xfb   :  { %v710_v52 = vadd.f32 %v1050_v47, %v1028_v46 }
 0x116   :  { %v1070_v53 = vpop.f32.mrb[4].mxu0 }
 0x117   :  { %v1092_v54 = vpop.f32.mrb[4].mxu1  ;;  %v1071_v55 = vpop.f32.mrb[5].mxu0 }
 0x118   :  { %v1093_v56 = vpop.f32.mrb[5].mxu1  ;;  %v1072_v57 = vadd.f32 %v1071_v55, %v1070_v53  ;;  %v1073_v59 = vpop.f32.mrb[6].mxu0 }
 0x119   :  { %v1094_v58 = vadd.f32 %v1093_v56, %v1092_v54  ;;  %v1095_v60 = vpop.f32.mrb[6].mxu1  ;;  %v1074_v61 = vpop.f32.mrb[7].mxu0 }
 0x11a   :  { %v1096_v62 = vpop.f32.mrb[7].mxu1  ;;  %v750_v63 = vadd.f32 %v1072_v57, %v710_v52 }
 0x11c   :  { %v790_v0 = vadd.f32 %v1094_v58, %v750_v63 }
 0x11e   :  { %v795_v1 = vpack.c.bf16 %v790_v0, %v790_v0 }
 0x120   :  { %1109 = vmatmul.mubr.msk.bf16.vlgmr.msra.gmra.mrb[8].mxu0 %vm812_vm1, %v795_v1 }
 0x1f3   :  { %v850_v3 = vpop.f32.mrb[8].mxu0 }
 0x1f4   :  { %v856_v4 = vmax.f32 %v850_v3, 0.0  ;;  %v1110_v5 = vpop.f32.mrb[9].mxu0 }
 0x1f5   :  { %v853_v6 = vpop.f32.mrb[10].mxu0 }
 0x1f6   :  { %v857_v7 = vpack.c.bf16 %v856_v4, %v856_v4  ;;  %v1111_v8 = vpop.f32.mrb[11].mxu0 }
 0x1f8   :  { %1117 = vmatmul.mubr.msk.bf16.vlgmr.msra.gmra.mrb[8].mxu1 %vm812_vm1, %v857_v7 }
 0x2cb   :  { %v911_v9 = vpop.f32.mrb[8].mxu1 }
 0x2cc   :  { %v1118_v10 = vpop.f32.mrb[9].mxu1  ;;  %v917_v11 = vmul.f32 %v911_v9, %v911_v9 }
 0x2cd   :  { %v914_v12 = vpop.f32.mrb[10].mxu1 }
 0x2ce   :  { %v1119_v13 = vpop.f32.mrb[11].mxu1  ;;  %918 = vadd.xlane.f32.xlu0 %v917_v11 }
 0x35b   :  { %v919_v14 = vpop.xlane.xlu0 %918 }
 0x35c   :  { %v920_v15 = vmax.f32 %v919_v14, 1e-24 }
 0x35e   :  { %1206 = vrsqrt.f32 %v920_v15 }
 0x368   :  { %v1207_v16 = vpop.eup %1206 }
 0x369   :  { %v922_v17 = vmul.f32 %v1207_v16, %v911_v9 }
 0x36b   :  { %923 = vst [vmem:[#allocation2] sm:$0xff] %v922_v17 }
 0x36c   :  { %928 = vsyncadd [#allocation3], 96  ;;  %s1235_s3 = smov [#allocation2]  }
 0x36d   :  { %s929_s8 = sshll.u32 %s1235_s3, 4  ;;  %s930_s8 = int_to_ptr.vmem [resolvable:$true] %s929_s8 }
 0x36e   :  { %s1208_s9 = scalar_lea.vmem %s930_s8, 32  ;;  %s1212_s10 = scalar_lea.vmem %s930_s8, 128 }
 0x36f   :  { %p1209_p0 = scmp.ne.s32.totalorder %s930_s8, %s1208_s9  ;;  %p1213_p1 = scmp.lt.s32.totalorder %s930_s8, %s930_s8 }
 0x370   :  { %p1214_p2 = scmp.lt.s32.totalorder %s1212_s10, %s1208_s9 }
 0x372   :  { %p1215_p3 = por %p1214_p2, %p1213_p1 }
 0x374   :  { %p1216_p4 = pnand %p1215_p3, %p1209_p0 }
 0x376   :  { %1219 = shalt.err (!%p1216_p4)
}
 0x377   :  { %s1220_s13 = scalar_lea.hbm %s1517_s4, 32 }
 0x378   :  { %p1221_p5 = scmp.ne.s32.totalorder %s1517_s4, %s1220_s13  ;;  %p1224_p6 = scmp.lt.u32.totalorder %s1220_s13, %s1517_s4 }
 0x37a   :  { %p1226_p7 = pnand %p1224_p6, %p1221_p5 }
 0x37c   :  { %1229 = shalt.err (!%p1226_p7)
}
 0x37d   :  { %s1236_s18 = smov 32   ;;  %s1237_s19 = smov 2  }
 0x37e   :  { %935 = dma.vmem_to_hbm [thread:$0]  %s930_s8, 32, %s1517_s4, [#allocation3], %s1236_s18, %s1236_s18, %s1237_s19  }
 0x37f   :  { %1230 = dma.done.wait [#allocation3], 128  }
 0x380   :  { %1231 = vsyncadd [#allocation3], 4294967168 }
 0x381   :  { %939 = vsyncpa [#allocation3], 1 }

</bundles_post_ra>
